<compile_context>
chip_gen: v7x
topology: tpu7x:2x2x1
jax: 0.10.0
libtpu: 0.0.40
codegen_flags: <defaults>
</compile_context>

<pallas_src>
import jax
import jax.numpy as jnp
from jax.experimental import pallas as pl
from jax.experimental.pallas import tpu as pltpu


def actor_kernel(x_ref, w1_ref, b1_ref, w2_ref, b2_ref, out_ref):
    x = x_ref[...]                                             # (TILE_B, D_in) f32
    # fc1 + relu: bf16 MXU operands, f32 accumulate, f32 epilogue.
    h = jnp.dot(x.astype(jnp.bfloat16), w1_ref[...],
                preferred_element_type=jnp.float32) + b1_ref[...]
    h = jnp.maximum(h, 0.0)
    # fc2 (output features padded to a lane multiple; padded bias = -1e30 -> exp() == 0 below).
    logits = jnp.dot(h.astype(jnp.bfloat16), w2_ref[...],
                     preferred_element_type=jnp.float32) + b2_ref[...]
    # Numerically stable softmax along the feature (last) axis — matches torch.softmax(..., dim=1).
    m = jnp.max(logits, axis=-1, keepdims=True)
    e = jnp.exp(logits - m)
    denom = jnp.sum(e, axis=-1, keepdims=True)
    out_ref[...] = (e * pl.reciprocal(denom, approx=True)).astype(out_ref.dtype)


def _round_up(v, m):
    return ((v + m - 1) // m) * m


def actor_forward(x, w1, b1, w2, b2, tile_b=512):
    """x: (B, D_in) or (D_in,). Returns softmax probs with matching leading shape."""
    squeeze = x.ndim == 1
    if squeeze:
        # torch path: len(shape)==1 -> softmax over dim 0. Equivalent to a batch of 1.
        x = x[None, :]
    x = x.astype(jnp.float32)

    B, D_in = x.shape
    H = w1.shape[1]
    D_out = w2.shape[1]

    # Pad output features to a multiple of 128 lanes so the output store is unmasked/lane-dense.
    d_out_pad = _round_up(max(D_out, 128), 128)

    # Weights as bf16 MXU operands; biases stay f32 (added after the f32 accumulate).
    w1b = w1.astype(jnp.bfloat16)
    b1f = b1.astype(jnp.float32).reshape(1, H)
    w2b = w2.astype(jnp.bfloat16)
    b2f = b2.astype(jnp.float32).reshape(1, D_out)
    if d_out_pad != D_out:
        w2b = jnp.pad(w2b, ((0, 0), (0, d_out_pad - D_out)))
        # -1e30 logits on padded lanes -> exp(pad - max) == 0 -> softmax unaffected.
        b2f = jnp.pad(b2f, ((0, 0), (0, d_out_pad - D_out)),
                      constant_values=jnp.float32(-1e30))

    # Sublane-aligned batch tile; pad B so every tile is full (partial tiles would be OOB).
    tile_b = _round_up(max(8, min(int(tile_b), _round_up(B, 8))), 8)
    b_pad = _round_up(B, tile_b)
    if b_pad != B:
        x = jnp.pad(x, ((0, b_pad - B), (0, 0)))

    grid = (b_pad // tile_b,)

    cost = pl.CostEstimate(
        flops=2 * b_pad * (D_in * H + H * d_out_pad),
        transcendentals=b_pad * d_out_pad,
        bytes_accessed=(b_pad * D_in * 4 + D_in * H * 2 + H * 4
                        + H * d_out_pad * 2 + d_out_pad * 4
                        + b_pad * d_out_pad * 4),
    )

    out = pl.pallas_call(
        actor_kernel,
        out_shape=jax.ShapeDtypeStruct((b_pad, d_out_pad), jnp.float32),
        grid=grid,
        in_specs=[
            pl.BlockSpec((tile_b, D_in), lambda i: (i, 0)),     # pipelined x tiles
            pl.BlockSpec((D_in, H), lambda i: (0, 0)),          # VMEM-resident weights/biases
            pl.BlockSpec((1, H), lambda i: (0, 0)),
            pl.BlockSpec((H, d_out_pad), lambda i: (0, 0)),
            pl.BlockSpec((1, d_out_pad), lambda i: (0, 0)),
        ],
        out_specs=pl.BlockSpec((tile_b, d_out_pad), lambda i: (i, 0)),
        compiler_params=pltpu.CompilerParams(
            dimension_semantics=("parallel",),
        ),
        cost_estimate=cost,
    )(x, w1b, b1f, w2b, b2f)

    out = out[:B, :D_out]
    if squeeze:
        out = out[0]
    return out


def init_actor_params(key, input_size, output_size, hidden=64):
    """Deterministic init mimicking nn.Linear's U(-1/sqrt(fan_in), 1/sqrt(fan_in))."""
    k1, k2, k3, k4 = jax.random.split(key, 4)
    bound1 = 1.0 / jnp.sqrt(jnp.float32(input_size))
    bound2 = 1.0 / jnp.sqrt(jnp.float32(hidden))
    w1 = jax.random.uniform(k1, (input_size, hidden), jnp.float32, -bound1, bound1)
    b1 = jax.random.uniform(k2, (1, hidden), jnp.float32, -bound1, bound1)
    w2 = jax.random.uniform(k3, (hidden, output_size), jnp.float32, -bound2, bound2)
    b2 = jax.random.uniform(k4, (1, output_size), jnp.float32, -bound2, bound2)
    return w1, b1, w2, b2


def _reference(x, w1, b1, w2, b2):
    h = jnp.maximum(x @ w1 + b1, 0.0)
    return jax.nn.softmax(h @ w2 + b2, axis=-1)


if __name__ == "__main__":
    key = jax.random.PRNGKey(0)
    kx, kp, kx2 = jax.random.split(key, 3)

    batch = 2
    input_size = 16
    output_size = 8

    x = jax.random.normal(kx, (batch, input_size), jnp.float32)
    w1, b1, w2, b2 = init_actor_params(kp, input_size, output_size)

    # --- small batch (single full tile) ---
    probs = jax.block_until_ready(actor_forward(x, w1, b1, w2, b2))
    probs_ref = _reference(x, w1, b1, w2, b2)
    assert probs.shape == (batch, output_size)
    # bf16 matmul operands + approx reciprocal -> looser tolerance than pure f32.
    assert jnp.allclose(probs, probs_ref, atol=2e-2, rtol=2e-2)
    assert jnp.allclose(jnp.sum(probs, axis=-1), 1.0, atol=1e-2)

    # --- 1-D (single observation) path, matches torch softmax(dim=0) ---
    probs1 = jax.block_until_ready(actor_forward(x[0], w1, b1, w2, b2))
    assert probs1.shape == (output_size,)
    assert jnp.allclose(probs1, probs_ref[0], atol=2e-2, rtol=2e-2)

    # --- gridded + padded batch path (B not a multiple of the tile, grid > 1) ---
    xb = jax.random.normal(kx2, (130, input_size), jnp.float32)
    probsb = jax.block_until_ready(actor_forward(xb, w1, b1, w2, b2, tile_b=64))
    probsb_ref = _reference(xb, w1, b1, w2, b2)
    assert probsb.shape == (130, output_size)
    assert jnp.allclose(probsb, probsb_ref, atol=2e-2, rtol=2e-2)
    assert jnp.allclose(jnp.sum(probsb, axis=-1), 1.0, atol=1e-2)

    print("KERNEL_OK")
</pallas_src>

<mosaic_0001>
module attributes {stable_mosaic.version = 11 : i64} {
  func.func @actor_kernel(%arg0: i32, %arg1: memref<8x16xf32, #tpu.memory_space<vmem>>, %arg2: memref<16x64xbf16, #tpu.memory_space<vmem>>, %arg3: memref<1x64xf32, #tpu.memory_space<vmem>>, %arg4: memref<64x128xbf16, #tpu.memory_space<vmem>>, %arg5: memref<1x128xf32, #tpu.memory_space<vmem>>, %arg6: memref<8x128xf32, #tpu.memory_space<vmem>>) attributes {dimension_semantics = [#tpu.dimension_semantics<parallel>], iteration_bounds = array<i64: 1>, scalar_prefetch = 0 : i64, scratch_operands = 0 : i64, tpu.core_type = #tpu.core_type<tc>, window_params = [{transform_indices = @transform_0, window_bounds = array<i64: 8, 16>}, {pipeline_mode = #tpu.pipeline_mode<synchronous>, transform_indices = @transform_1, window_bounds = array<i64: 16, 64>}, {pipeline_mode = #tpu.pipeline_mode<synchronous>, transform_indices = @transform_2, window_bounds = array<i64: 1, 64>}, {pipeline_mode = #tpu.pipeline_mode<synchronous>, transform_indices = @transform_3, window_bounds = array<i64: 64, 128>}, {pipeline_mode = #tpu.pipeline_mode<synchronous>, transform_indices = @transform_4, window_bounds = array<i64: 1, 128>}, {transform_indices = @transform_5, window_bounds = array<i64: 8, 128>}]} {
    %c0 = arith.constant 0 : index
    %c0_0 = arith.constant 0 : index
    %0 = vector.load %arg1[%c0, %c0_0] : memref<8x16xf32, #tpu.memory_space<vmem>>, vector<8x16xf32>
    %1 = arith.truncf %0 : vector<8x16xf32> to vector<8x16xbf16>
    %c0_1 = arith.constant 0 : index
    %c0_2 = arith.constant 0 : index
    %2 = vector.load %arg2[%c0_1, %c0_2] : memref<16x64xbf16, #tpu.memory_space<vmem>>, vector<16x64xbf16>
    %cst = arith.constant dense<0.000000e+00> : vector<8x64xf32>
    %3 = tpu.matmul %1, %2, %cst {dimension_numbers = #tpu.dot_dimension_numbers<[1], [0], [0], [1], [0, 0, 1, 1], [], []>} : vector<8x16xbf16>, vector<16x64xbf16>, vector<8x64xf32> -> vector<8x64xf32>
    %c0_3 = arith.constant 0 : index
    %c0_4 = arith.constant 0 : index
    %4 = vector.load %arg3[%c0_3, %c0_4] : memref<1x64xf32, #tpu.memory_space<vmem>>, vector<1x64xf32>
    %5 = vector.broadcast %4 : vector<1x64xf32> to vector<8x64xf32>
    %6 = arith.addf %3, %5 : vector<8x64xf32>
    %cst_5 = arith.constant 0.000000e+00 : f32
    %7 = vector.broadcast %cst_5 : f32 to vector<8x64xf32>
    %8 = arith.maximumf %6, %7 : vector<8x64xf32>
    %9 = arith.truncf %8 : vector<8x64xf32> to vector<8x64xbf16>
    %c0_6 = arith.constant 0 : index
    %c0_7 = arith.constant 0 : index
    %10 = vector.load %arg4[%c0_6, %c0_7] : memref<64x128xbf16, #tpu.memory_space<vmem>>, vector<64x128xbf16>
    %cst_8 = arith.constant dense<0.000000e+00> : vector<8x128xf32>
    %11 = tpu.matmul %9, %10, %cst_8 {dimension_numbers = #tpu.dot_dimension_numbers<[1], [0], [0], [1], [0, 0, 1, 1], [], []>} : vector<8x64xbf16>, vector<64x128xbf16>, vector<8x128xf32> -> vector<8x128xf32>
    %c0_9 = arith.constant 0 : index
    %c0_10 = arith.constant 0 : index
    %12 = vector.load %arg5[%c0_9, %c0_10] : memref<1x128xf32, #tpu.memory_space<vmem>>, vector<1x128xf32>
    %13 = vector.broadcast %12 : vector<1x128xf32> to vector<8x128xf32>
    %14 = arith.addf %11, %13 : vector<8x128xf32>
    %cst_11 = arith.constant dense<0xFF800000> : vector<8xf32>
    %15 = vector.multi_reduction <maximumf>, %14, %cst_11 [1] : vector<8x128xf32> to vector<8xf32>
    %16 = vector.shape_cast %15 : vector<8xf32> to vector<8x1xf32>
    %17 = vector.broadcast %16 : vector<8x1xf32> to vector<8x128xf32>
    %18 = arith.subf %14, %17 : vector<8x128xf32>
    %19 = math.exp %18 : vector<8x128xf32>
    %cst_12 = arith.constant dense<0.000000e+00> : vector<8xf32>
    %20 = vector.multi_reduction <add>, %19, %cst_12 [1] : vector<8x128xf32> to vector<8xf32>
    %21 = vector.shape_cast %20 : vector<8xf32> to vector<8x1xf32>
    %22 = tpu.reciprocal %21 {approx = true} : vector<8x1xf32> -> vector<8x1xf32>
    %23 = vector.broadcast %22 : vector<8x1xf32> to vector<8x128xf32>
    %24 = arith.mulf %19, %23 : vector<8x128xf32>
    %c0_13 = arith.constant 0 : index
    %c0_14 = arith.constant 0 : index
    %25 = vector.load %arg6[%c0_13, %c0_14] : memref<8x128xf32, #tpu.memory_space<vmem>>, vector<8x128xf32>
    tpu.vector_store %arg6[%c0_13, %c0_14], %24 {strides = array<i32>} : memref<8x128xf32, #tpu.memory_space<vmem>>, vector<8x128xf32>,
    return
  }
  func.func @transform_0(%arg0: i32) -> (i32, i32) {
    %c0_i32 = arith.constant 0 : i32
    %c0_i32_0 = arith.constant 0 : i32
    return %arg0, %c0_i32 : i32, i32
  }
  func.func @transform_1(%arg0: i32) -> (i32, i32) {
    %c0_i32 = arith.constant 0 : i32
    %c0_i32_0 = arith.constant 0 : i32
    %c0_i32_1 = arith.constant 0 : i32
    return %c0_i32, %c0_i32_0 : i32, i32
  }
  func.func @transform_2(%arg0: i32) -> (i32, i32) {
    %c0_i32 = arith.constant 0 : i32
    %c0_i32_0 = arith.constant 0 : i32
    %c0_i32_1 = arith.constant 0 : i32
    return %c0_i32, %c0_i32_0 : i32, i32
  }
  func.func @transform_3(%arg0: i32) -> (i32, i32) {
    %c0_i32 = arith.constant 0 : i32
    %c0_i32_0 = arith.constant 0 : i32
    %c0_i32_1 = arith.constant 0 : i32
    return %c0_i32, %c0_i32_0 : i32, i32
  }
  func.func @transform_4(%arg0: i32) -> (i32, i32) {
    %c0_i32 = arith.constant 0 : i32
    %c0_i32_0 = arith.constant 0 : i32
    %c0_i32_1 = arith.constant 0 : i32
    return %c0_i32, %c0_i32_0 : i32, i32
  }
  func.func @transform_5(%arg0: i32) -> (i32, i32) {
    %c0_i32 = arith.constant 0 : i32
    %c0_i32_0 = arith.constant 0 : i32
    return %arg0, %c0_i32 : i32, i32
  }
}

</mosaic_0001>

<bundles_post_ra>
// kernel: tpu_custom_call.1
= control target key start
LH: loop header
LB: loop body
LE: loop exit
PB: predicated region body
PF: predicated region fallthrough
CT: control target
= control target key end

     0   :  { %10 = vsyncpa [#allocation3], 0  ;;  %s476_s0 = inlined_call_operand.hbm [shape: f32[8,16], index: 0, kind: input, shape index: {}]   ;;  %s477_s1 = inlined_call_operand.hbm [shape: bf16[16,64], index: 1, kind: input, shape index: {}]   ;;  %s478_s2 = inlined_call_operand.vmem [shape: f32[1,64], index: 2, kind: input, shape index: {}]   ;;  %s479_s3 = inlined_call_operand.hbm [shape: bf16[64,128], index: 3, kind: input, shape index: {}]   ;;  %s480_s4 = inlined_call_operand.vmem [shape: f32[1,128], index: 4, kind: input, shape index: {}]   ;;  %s481_s5 = inlined_call_operand.hbm [shape: f32[8,128], index: 5, kind: output, shape index: {}]  }
   0x1   :  { %11 = vsyncpa [#allocation6], 0 }
   0x2   :  { %12 = vsyncpa [#allocation4], 0  ;;  %s378_s18 = smov [#allocation5]   ;;  %s284_s22 = scalar_lea.hbm %s477_s1, 128 }
   0x3   :  { %s28_s19 = sshll.u32 %s378_s18, 4  ;;  %p285_p0 = scmp.ne.s32.totalorder %s477_s1, %s284_s22  ;;  %s29_s19 = int_to_ptr.vmem [resolvable:$true] %s28_s19 }
   0x4   :  { %p288_p1 = scmp.lt.u32.totalorder %s284_s22, %s477_s1 }
   0x6   :  { %p290_p2 = pnand %p288_p1, %p285_p0 }
   0x8   :  { %293 = shalt.err (!%p290_p2)
}
   0x9   :  { %s294_s27 = scalar_lea.vmem %s29_s19, 128  ;;  %p299_p4 = scmp.lt.s32.totalorder %s29_s19, %s29_s19 }
   0xa   :  { %p295_p3 = scmp.ne.s32.totalorder %s29_s19, %s294_s27  ;;  %p300_p5 = scmp.lt.s32.totalorder %s294_s27, %s294_s27 }
   0xc   :  { %p301_p6 = por %p300_p5, %p299_p4 }
   0xe   :  { %p302_p7 = pnand %p301_p6, %p295_p3 }
  0x10   :  { %305 = shalt.err (!%p302_p7)
}
  0x11   :  { %s379_s28 = smov 64   ;;  %s380_s29 = smov 4  }
  0x12   :  { %34 = dma.hbm_to_vmem [thread:$0]  %s477_s1, 128, %s29_s19, [#allocation6], %s379_s28, %s379_s28, %s380_s29  }
  0x13   :  { %s381_s7 = smov [#allocation2]   ;;  %s382_s9 = smov [#allocation7]  }
  0x14   :  { %s19_s8 = sshll.u32 %s381_s7, 4  ;;  %s42_s10 = sshll.u32 %s382_s9, 4  ;;  %s20_s8 = int_to_ptr.vmem [resolvable:$true] %s19_s8  ;;  %s43_s10 = int_to_ptr.vmem [resolvable:$true] %s42_s10 }
  0x15   :  { %s306_s13 = scalar_lea.hbm %s476_s0, 128 }
  0x16   :  { %p307_p8 = scmp.ne.s32.totalorder %s476_s0, %s306_s13  ;;  %p310_p9 = scmp.lt.u32.totalorder %s306_s13, %s476_s0 }
  0x18   :  { %p312_p10 = pnand %p310_p9, %p307_p8 }
  0x1a   :  { %315 = shalt.err (!%p312_p10)
}
  0x1b   :  { %s316_s1 = scalar_lea.vmem %s20_s8, 128  ;;  %p321_p12 = scmp.lt.s32.totalorder %s20_s8, %s20_s8 }
  0x1c   :  { %p317_p11 = scmp.ne.s32.totalorder %s20_s8, %s316_s1  ;;  %p322_p13 = scmp.lt.s32.totalorder %s316_s1, %s316_s1 }
  0x1e   :  { %p323_p0 = por %p322_p13, %p321_p12 }
  0x20   :  { %p324_p1 = pnand %p323_p0, %p317_p11 }
  0x22   :  { %327 = shalt.err (!%p324_p1)
}
  0x23   :  { %22 = dma.hbm_to_vmem [thread:$0]  %s476_s0, 128, %s20_s8, [#allocation3]  }
  0x24   :  { %s328_s22 = scalar_lea.hbm %s479_s3, 512 }
  0x25   :  { %p329_p2 = scmp.ne.s32.totalorder %s479_s3, %s328_s22  ;;  %p332_p3 = scmp.lt.u32.totalorder %s328_s22, %s479_s3 }
  0x27   :  { %p334_p4 = pnand %p332_p3, %p329_p2 }
  0x29   :  { %337 = shalt.err (!%p334_p4)
}
  0x2a   :  { %s338_s27 = scalar_lea.vmem %s43_s10, 512  ;;  %p343_p6 = scmp.lt.s32.totalorder %s43_s10, %s43_s10 }
  0x2b   :  { %p339_p5 = scmp.ne.s32.totalorder %s43_s10, %s338_s27  ;;  %p344_p7 = scmp.lt.s32.totalorder %s338_s27, %s338_s27 }
  0x2d   :  { %p345_p8 = por %p344_p7, %p343_p6 }
  0x2f   :  { %p346_p9 = pnand %p345_p8, %p339_p5 }
  0x31   :  { %349 = shalt.err (!%p346_p9)
}
  0x32   :  { %48 = dma.hbm_to_vmem [thread:$0]  %s479_s3, 512, %s43_s10, [#allocation6], %s379_s28, %s379_s28, %s380_s29  }
  0x33   :  { %372 = dma.done.wait [#allocation3], 128  }
  0x34   :  { %373 = vsyncadd [#allocation3], 4294967168 }
  0x35   :  { %374 = dma.done.wait [#allocation6], 640  }
  0x36   :  { %375 = vsyncadd [#allocation6], 4294966656  ;;  %v383_v0 = vmov 0.0   ;;  %vm384_vm0 = vmmov 0   ;;  %v275_v1 = vld [vmem:[#allocation5] sm:$0xff]   ;;  %v61_v2 = vld [vmem:[#allocation2] sm:$0xff] }
  0x37   :  { %249 = vmatprep.subr.bf16.mxu0 %v383_v0  ;;  %251 = vmatprep.mubr.msk.bf16.mxu0 %vm384_vm0, %v383_v0  ;;  %v62_v3 = vpack.c.bf16 %v61_v2, %v61_v2  ;;  %vm78_vm1 = vcmask 130048   ;;  %v276_v4 = vld [vmem:[#allocation7] sm:$0xff]   ;;  %v277_v5 = vld [vmem:[#allocation7 + $0x8] sm:$0xff]   ;;  %v278_v6 = vld [vmem:[#allocation7 + $0x10] sm:$0xff]   ;;  %vm163_vm2 = vcmask 523264  }
  0x38   :  { %255 = vmatprep.subr.bf16.mxu1 %v383_v0  ;;  %263 = vmatprep.mubr.msk.bf16.mxu1 %vm384_vm0, %v383_v0  ;;  %v279_v7 = vld [vmem:[#allocation7 + $0x18] sm:$0xff]   ;;  %v233_v8 = vld [vmem:[%s478_s2] ss:$0 sm:$0xff]  ;;  %s385_s2 = smov [#allocation8]  }
  0x39   :  { %250 = vmatpush3.bf16.msra.mxu0 %v275_v1  ;;  %256 = vmatpush3.bf16.msra.mxu1 %v276_v4  ;;  %v236_v16 = vld [vmem:[%s480_s4] ss:$0 sm:$0xff]  ;;  %s223_s7 = sshll.u32 %s385_s2, 4  ;;  %s224_s7 = int_to_ptr.vmem [resolvable:$true] %s223_s7 }
  0x3a   :  { %257 = vmatprep.subr.bf16.mxu1 %v383_v0  ;;  %s350_s4 = scalar_lea.vmem %s224_s7, 128  ;;  %p355_p11 = scmp.lt.s32.totalorder %s224_s7, %s224_s7 }
  0x3b   :  { %p351_p10 = scmp.ne.s32.totalorder %s224_s7, %s350_s4  ;;  %p356_p12 = scmp.lt.s32.totalorder %s350_s4, %s350_s4 }
  0x3c   :  { %252 = vmatmul.mubr.msk.bf16.vlgmr.msra.gmra.mrb[0].mxu0 %vm78_vm1, %v62_v3 }
  0x3d   :  { %258 = vmatpush3.bf16.msra.mxu1 %v277_v5  ;;  %p357_p13 = por %p356_p12, %p355_p11 }
  0x3e   :  { %259 = vmatprep.subr.bf16.mxu1 %v383_v0 }
  0x3f   :  { %p358_p0 = pnand %p357_p13, %p351_p10 }
  0x41   :  { %260 = vmatpush3.bf16.msra.mxu1 %v278_v6 }
  0x42   :  { %261 = vmatprep.subr.bf16.mxu1 %v383_v0 }
  0x45   :  { %262 = vmatpush3.bf16.msra.mxu1 %v279_v7 }
 0x10f   :  { %v116_v9 = vpop.f32.mrb[0].mxu0 }
 0x110   :  { %v117_v10 = vadd.f32 %v233_v8, %v116_v9  ;;  %v253_v11 = vpop.f32.mrb[1].mxu0 }
 0x111   :  { %v119_v12 = vpop.f32.mrb[2].mxu0 }
 0x112   :  { %v122_v13 = vmax.f32 %v117_v10, 0.0  ;;  %v254_v14 = vpop.f32.mrb[3].mxu0 }
 0x114   :  { %v123_v15 = vpack.c.bf16 %v122_v13, %v122_v13 }
 0x116   :  { %264 = vmatmul.mubr.msk.bf16.vlgmr.msra.gmra.mrb[0].mxu1 %vm163_vm2, %v123_v15 }
 0x1e9   :  { %v201_v17 = vpop.f32.mrb[0].mxu1 }
 0x1ea   :  { %v202_v18 = vadd.f32 %v236_v16, %v201_v17  ;;  %v265_v19 = vpop.f32.mrb[1].mxu1 }
 0x1eb   :  { %v204_v20 = vpop.f32.mrb[2].mxu1 }
 0x1ec   :  { %207 = vmax.xlane.f32.xlu0 %v202_v18  ;;  %v266_v21 = vpop.f32.mrb[3].mxu1 }
 0x279   :  { %v208_v22 = vpop.xlane.xlu0 %207 }
 0x27a   :  { %v209_v23 = vsub.f32 %v202_v18, %v208_v22 }
 0x27c   :  { %v210_v24 = vmul.f32 1.442695, %v209_v23 }
 0x27e   :  { %280 = vpow2.f32 %v210_v24 }
 0x288   :  { %v281_v25 = vpop.eup %280 }
 0x289   :  { %212 = vadd.xlane.f32.xlu0 %v281_v25 }
 0x316   :  { %v213_v26 = vpop.xlane.xlu0 %212 }
 0x317   :  { %282 = vrcp.f32 %v213_v26 }
 0x321   :  { %v283_v27 = vpop.eup %282 }
 0x322   :  { %v215_v28 = vmul.f32 %v283_v27, %v281_v25 }
 0x324   :  { %216 = vst [vmem:[#allocation8] sm:$0xff] %v215_v28 }
 0x325   :  { %361 = shalt.err (!%p358_p0)
}
 0x326   :  { %s362_s10 = scalar_lea.hbm %s481_s5, 128 }
 0x327   :  { %p363_p1 = scmp.ne.s32.totalorder %s481_s5, %s362_s10  ;;  %p366_p2 = scmp.lt.u32.totalorder %s362_s10, %s481_s5 }
 0x329   :  { %p368_p3 = pnand %p366_p2, %p363_p1 }
 0x32b   :  { %371 = shalt.err (!%p368_p3)
}
 0x32c   :  { %226 = dma.vmem_to_hbm [thread:$0]  %s224_s7, 128, %s481_s5, [#allocation4]  }
 0x32d   :  { %376 = dma.done.wait [#allocation4], 128  }
 0x32e   :  { %377 = vsyncadd [#allocation4], 4294967168 }
 0x32f   :  { %230 = vsyncpa [#allocation3], 1 }
 0x330   :  { %231 = vsyncpa [#allocation6], 1 }
 0x331   :  { %232 = vsyncpa [#allocation4], 1 }

</bundles_post_ra>
